<compile_context>
chip_gen: v7x
topology: tpu7x:2x2x1
jax: 0.10.0
libtpu: 0.0.40
codegen_flags: <defaults>
</compile_context>

<pallas_src>
import jax
import jax.numpy as jnp
from jax import lax
from jax.experimental import pallas as pl
from jax.experimental.pallas import tpu as pltpu

EPS = 1e-8


# ---------------------------------------------------------------------------
# Fused Pallas kernel: one (channel-tile, batch) block per grid step.
# ---------------------------------------------------------------------------
def _adain_kernel(c_ref, gw_ref, gb_ref, bw_ref, bb_ref, x_ref, o_ref):
    x = x_ref[0]                                          # (TC, T) f32
    inv_t = 1.0 / x.shape[-1]

    # Instance-norm statistics over time (biased variance, matches torch.mean).
    u = jnp.sum(x, axis=-1, keepdims=True) * inv_t        # (TC, 1)
    d = x - u
    var = jnp.sum(d * d, axis=-1, keepdims=True) * inv_t  # (TC, 1), >= 0
    inv_std = lax.rsqrt(var + EPS)                        # EUP rsqrt

    # gamma/beta = Linear(2*dim_c, C)(c) for this channel tile, produced
    # directly as (TC, 1) columns: broadcast-mul + lane reduce (tiny mat-vec).
    c = c_ref[0]                                          # (1, 2*dim_c)
    gamma = jnp.sum(gw_ref[...] * c, axis=-1, keepdims=True) + gb_ref[...]
    beta = jnp.sum(bw_ref[...] * c, axis=-1, keepdims=True) + bb_ref[...]

    o_ref[0] = (d * inv_std) * gamma + beta


def _pick_channel_tile(C, T, vmem_budget_bytes=8 << 20):
    """Largest channel tile that keeps (in + out, double-buffered) f32 blocks
    comfortably under the v7x scoped-VMEM budget."""
    for cand in (128, 64, 32, 16, 8):
        if C % cand == 0 and 4 * cand * T * 4 <= vmem_budget_bytes:
            return cand
    return C  # small / odd channel counts: single block covers all channels
    # TODO(synk): for extremely long T (block itself > budget) a two-pass /
    # running-stats tiling over T would be needed; not required at these sizes.


# ---------------------------------------------------------------------------
# Forward wrapper
# ---------------------------------------------------------------------------
def adain_forward(x, c_src, c_trg, params):
    """x: (B, C, T) f32, c_src/c_trg: (B, dim_c) f32 -> (B, C, T) f32."""
    B, C, T = x.shape
    dim_c = c_src.shape[-1]

    # Only glue: concat the two codes once, laid out as (B, 1, 2*dim_c) rows.
    c = jnp.concatenate([c_src, c_trg], axis=-1).reshape(B, 1, 2 * dim_c)

    tc = _pick_channel_tile(C, T)
    assert C % tc == 0
    grid = (C // tc, B)  # channel tiles outer -> weight blocks reused over b

    return pl.pallas_call(
        _adain_kernel,
        out_shape=jax.ShapeDtypeStruct((B, C, T), jnp.float32),
        grid_spec=pltpu.PrefetchScalarGridSpec(
            num_scalar_prefetch=0,
            grid=grid,
            in_specs=[
                pl.BlockSpec((1, 1, 2 * dim_c), lambda j, b: (b, 0, 0)),  # c
                pl.BlockSpec((tc, 2 * dim_c), lambda j, b: (j, 0)),       # gamma W
                pl.BlockSpec((tc, 1), lambda j, b: (j, 0)),               # gamma b
                pl.BlockSpec((tc, 2 * dim_c), lambda j, b: (j, 0)),       # beta W
                pl.BlockSpec((tc, 1), lambda j, b: (j, 0)),               # beta b
                pl.BlockSpec((1, tc, T), lambda j, b: (b, j, 0)),         # x
            ],
            out_specs=pl.BlockSpec((1, tc, T), lambda j, b: (b, j, 0)),
        ),
        compiler_params=pltpu.CompilerParams(
            dimension_semantics=("parallel", "parallel")),
    )(c, params["gamma_w"], params["gamma_b_col"],
      params["beta_w"], params["beta_b_col"], x)


# ---------------------------------------------------------------------------
# Pure-JAX reference (mirrors the PyTorch forward) for validation
# ---------------------------------------------------------------------------
def reference_forward(x, c_src, c_trg, params):
    u = jnp.mean(x, axis=2, keepdims=True)
    var = jnp.mean((x - u) * (x - u), axis=2, keepdims=True)
    std = jnp.sqrt(var + EPS)
    c = jnp.concatenate([c_src, c_trg], axis=-1)
    hi = lax.Precision.HIGHEST
    gamma = jnp.dot(c, params["gamma_w"].T, precision=hi) + params["gamma_b"]
    beta = jnp.dot(c, params["beta_w"].T, precision=hi) + params["beta_b"]
    h = (x - u) / std
    return h * gamma[:, :, None] + beta[:, :, None]


# ---------------------------------------------------------------------------
def make_params(key, dim_in, dim_c):
    k1, k2, k3, k4 = jax.random.split(key, 4)
    bound = 1.0 / float(2 * dim_c) ** 0.5  # PyTorch Linear default init scale
    gamma_w = jax.random.uniform(k1, (dim_in, 2 * dim_c), jnp.float32, -bound, bound)
    gamma_b = jax.random.uniform(k2, (dim_in,), jnp.float32, -bound, bound)
    beta_w = jax.random.uniform(k3, (dim_in, 2 * dim_c), jnp.float32, -bound, bound)
    beta_b = jax.random.uniform(k4, (dim_in,), jnp.float32, -bound, bound)
    return {
        # PyTorch layout (used by the reference):
        "gamma_w": gamma_w, "gamma_b": gamma_b,
        "beta_w": beta_w, "beta_b": beta_b,
        # Kernel layout, hoisted out of the forward pass: biases as columns.
        "gamma_b_col": gamma_b.reshape(dim_in, 1),
        "beta_b_col": beta_b.reshape(dim_in, 1),
    }


if __name__ == "__main__":
    key = jax.random.PRNGKey(0)
    kx, ks, kt, kp = jax.random.split(key, 4)

    B, DIM_IN, DIM_C, T = 2, 256, 64, 128
    x = jax.random.normal(kx, (B, DIM_IN, T), jnp.float32)
    c_src = jax.random.normal(ks, (B, DIM_C), jnp.float32)
    c_trg = jax.random.normal(kt, (B, DIM_C), jnp.float32)
    params = make_params(kp, DIM_IN, DIM_C)

    out = adain_forward(x, c_src, c_trg, params)
    jax.block_until_ready(out)
    assert out.shape == (B, DIM_IN, T), out.shape

    ref = reference_forward(x, c_src, c_trg, params)
    if not jnp.allclose(out, ref, atol=1e-3, rtol=1e-3):
        max_err = float(jnp.max(jnp.abs(out - ref)))
        raise AssertionError(f"mismatch vs reference, max abs err = {max_err}")

    print("KERNEL_OK")
</pallas_src>

<mosaic_0001>
module attributes {stable_mosaic.version = 11 : i64} {
  func.func @_adain_kernel(%arg0: i32, %arg1: i32, %arg2: memref<1x1x128xf32, #tpu.memory_space<vmem>>, %arg3: memref<128x128xf32, #tpu.memory_space<vmem>>, %arg4: memref<128x1xf32, #tpu.memory_space<vmem>>, %arg5: memref<128x128xf32, #tpu.memory_space<vmem>>, %arg6: memref<128x1xf32, #tpu.memory_space<vmem>>, %arg7: memref<1x128x128xf32, #tpu.memory_space<vmem>>, %arg8: memref<1x128x128xf32, #tpu.memory_space<vmem>>) attributes {dimension_semantics = [#tpu.dimension_semantics<parallel>, #tpu.dimension_semantics<parallel>], iteration_bounds = array<i64: 2, 2>, scalar_prefetch = 0 : i64, scratch_operands = 0 : i64, tpu.core_type = #tpu.core_type<tc>, window_params = [{transform_indices = @transform_0, window_bounds = array<i64: 1, 1, 128>}, {transform_indices = @transform_1, window_bounds = array<i64: 128, 128>}, {transform_indices = @transform_2, window_bounds = array<i64: 128, 1>}, {transform_indices = @transform_3, window_bounds = array<i64: 128, 128>}, {transform_indices = @transform_4, window_bounds = array<i64: 128, 1>}, {transform_indices = @transform_5, window_bounds = array<i64: 1, 128, 128>}, {transform_indices = @transform_6, window_bounds = array<i64: 1, 128, 128>}]} {
    %c0 = arith.constant 0 : index
    %c0_0 = arith.constant 0 : index
    %c0_1 = arith.constant 0 : index
    %0 = vector.load %arg7[%c0, %c0_0, %c0_1] : memref<1x128x128xf32, #tpu.memory_space<vmem>>, vector<1x128x128xf32>
    %1 = vector.shape_cast %0 : vector<1x128x128xf32> to vector<128x128xf32>
    %cst = arith.constant dense<0.000000e+00> : vector<128xf32>
    %2 = vector.multi_reduction <add>, %1, %cst [1] : vector<128x128xf32> to vector<128xf32>
    %3 = vector.shape_cast %2 : vector<128xf32> to vector<128x1xf32>
    %cst_2 = arith.constant 7.812500e-03 : f32
    %4 = vector.broadcast %cst_2 : f32 to vector<128x1xf32>
    %5 = arith.mulf %3, %4 : vector<128x1xf32>
    %6 = vector.broadcast %5 : vector<128x1xf32> to vector<128x128xf32>
    %7 = arith.subf %1, %6 : vector<128x128xf32>
    %8 = arith.mulf %7, %7 : vector<128x128xf32>
    %cst_3 = arith.constant dense<0.000000e+00> : vector<128xf32>
    %9 = vector.multi_reduction <add>, %8, %cst_3 [1] : vector<128x128xf32> to vector<128xf32>
    %10 = vector.shape_cast %9 : vector<128xf32> to vector<128x1xf32>
    %cst_4 = arith.constant 7.812500e-03 : f32
    %11 = vector.broadcast %cst_4 : f32 to vector<128x1xf32>
    %12 = arith.mulf %10, %11 : vector<128x1xf32>
    %cst_5 = arith.constant 9.99999993E-9 : f32
    %13 = vector.broadcast %cst_5 : f32 to vector<128x1xf32>
    %14 = arith.addf %12, %13 : vector<128x1xf32>
    %15 = math.rsqrt %14 : vector<128x1xf32>
    %c0_6 = arith.constant 0 : index
    %c0_7 = arith.constant 0 : index
    %c0_8 = arith.constant 0 : index
    %16 = vector.load %arg2[%c0_6, %c0_7, %c0_8] : memref<1x1x128xf32, #tpu.memory_space<vmem>>, vector<1x1x128xf32>
    %17 = vector.shape_cast %16 : vector<1x1x128xf32> to vector<1x128xf32>
    %c0_9 = arith.constant 0 : index
    %c0_10 = arith.constant 0 : index
    %18 = vector.load %arg3[%c0_9, %c0_10] : memref<128x128xf32, #tpu.memory_space<vmem>>, vector<128x128xf32>
    %19 = vector.broadcast %17 : vector<1x128xf32> to vector<128x128xf32>
    %20 = arith.mulf %18, %19 : vector<128x128xf32>
    %cst_11 = arith.constant dense<0.000000e+00> : vector<128xf32>
    %21 = vector.multi_reduction <add>, %20, %cst_11 [1] : vector<128x128xf32> to vector<128xf32>
    %22 = vector.shape_cast %21 : vector<128xf32> to vector<128x1xf32>
    %c0_12 = arith.constant 0 : index
    %c0_13 = arith.constant 0 : index
    %23 = vector.load %arg4[%c0_12, %c0_13] : memref<128x1xf32, #tpu.memory_space<vmem>>, vector<128x1xf32>
    %24 = arith.addf %22, %23 : vector<128x1xf32>
    %c0_14 = arith.constant 0 : index
    %c0_15 = arith.constant 0 : index
    %25 = vector.load %arg5[%c0_14, %c0_15] : memref<128x128xf32, #tpu.memory_space<vmem>>, vector<128x128xf32>
    %26 = vector.broadcast %17 : vector<1x128xf32> to vector<128x128xf32>
    %27 = arith.mulf %25, %26 : vector<128x128xf32>
    %cst_16 = arith.constant dense<0.000000e+00> : vector<128xf32>
    %28 = vector.multi_reduction <add>, %27, %cst_16 [1] : vector<128x128xf32> to vector<128xf32>
    %29 = vector.shape_cast %28 : vector<128xf32> to vector<128x1xf32>
    %c0_17 = arith.constant 0 : index
    %c0_18 = arith.constant 0 : index
    %30 = vector.load %arg6[%c0_17, %c0_18] : memref<128x1xf32, #tpu.memory_space<vmem>>, vector<128x1xf32>
    %31 = arith.addf %29, %30 : vector<128x1xf32>
    %32 = vector.broadcast %15 : vector<128x1xf32> to vector<128x128xf32>
    %33 = arith.mulf %7, %32 : vector<128x128xf32>
    %34 = vector.broadcast %24 : vector<128x1xf32> to vector<128x128xf32>
    %35 = arith.mulf %33, %34 : vector<128x128xf32>
    %36 = vector.broadcast %31 : vector<128x1xf32> to vector<128x128xf32>
    %37 = arith.addf %35, %36 : vector<128x128xf32>
    %c0_19 = arith.constant 0 : index
    %c0_20 = arith.constant 0 : index
    %c0_21 = arith.constant 0 : index
    %38 = vector.load %arg8[%c0_19, %c0_20, %c0_21] : memref<1x128x128xf32, #tpu.memory_space<vmem>>, vector<1x128x128xf32>
    %39 = vector.shape_cast %38 : vector<1x128x128xf32> to vector<128x128xf32>
    %40 = vector.shape_cast %37 : vector<128x128xf32> to vector<1x128x128xf32>
    tpu.vector_store %arg8[%c0_19, %c0_20, %c0_21], %40 {strides = array<i32>} : memref<1x128x128xf32, #tpu.memory_space<vmem>>, vector<1x128x128xf32>,
    return
  }
  func.func @transform_0(%arg0: i32, %arg1: i32) -> (i32, i32, i32) {
    %c0_i32 = arith.constant 0 : i32
    %c0_i32_0 = arith.constant 0 : i32
    %c0_i32_1 = arith.constant 0 : i32
    return %arg1, %c0_i32, %c0_i32_0 : i32, i32, i32
  }
  func.func @transform_1(%arg0: i32, %arg1: i32) -> (i32, i32) {
    %c0_i32 = arith.constant 0 : i32
    %c0_i32_0 = arith.constant 0 : i32
    return %arg0, %c0_i32 : i32, i32
  }
  func.func @transform_2(%arg0: i32, %arg1: i32) -> (i32, i32) {
    %c0_i32 = arith.constant 0 : i32
    %c0_i32_0 = arith.constant 0 : i32
    return %arg0, %c0_i32 : i32, i32
  }
  func.func @transform_3(%arg0: i32, %arg1: i32) -> (i32, i32) {
    %c0_i32 = arith.constant 0 : i32
    %c0_i32_0 = arith.constant 0 : i32
    return %arg0, %c0_i32 : i32, i32
  }
  func.func @transform_4(%arg0: i32, %arg1: i32) -> (i32, i32) {
    %c0_i32 = arith.constant 0 : i32
    %c0_i32_0 = arith.constant 0 : i32
    return %arg0, %c0_i32 : i32, i32
  }
  func.func @transform_5(%arg0: i32, %arg1: i32) -> (i32, i32, i32) {
    %c0_i32 = arith.constant 0 : i32
    %c0_i32_0 = arith.constant 0 : i32
    return %arg1, %arg0, %c0_i32 : i32, i32, i32
  }
  func.func @transform_6(%arg0: i32, %arg1: i32) -> (i32, i32, i32) {
    %c0_i32 = arith.constant 0 : i32
    %c0_i32_0 = arith.constant 0 : i32
    return %arg1, %arg0, %c0_i32 : i32, i32, i32
  }
}

</mosaic_0001>

<bundles_post_ra>
// kernel: tpu_custom_call.1
= control target key start
LH: loop header
LB: loop body
LE: loop exit
PB: predicated region body
PF: predicated region fallthrough
CT: control target
= control target key end

     0   :  { %s2244_s0 = inlined_call_operand.vmem [shape: f32[2,1,128], index: 0, kind: input, shape index: {}]   ;;  %s2245_s1 = inlined_call_operand.hbm [shape: f32[256,128], index: 1, kind: input, shape index: {}]   ;;  %s2246_s2 = inlined_call_operand.vmem [shape: f32[256,1], index: 2, kind: input, shape index: {}]   ;;  %s2247_s3 = inlined_call_operand.hbm [shape: f32[256,128], index: 3, kind: input, shape index: {}]   ;;  %s2248_s4 = inlined_call_operand.vmem [shape: f32[256,1], index: 4, kind: input, shape index: {}]   ;;  %s2249_s5 = inlined_call_operand.vmem [shape: f32[2,256,128], index: 5, kind: input, shape index: {}]   ;;  %s2250_s6 = inlined_call_operand.hbm [shape: f32[2,256,128], index: 6, kind: output, shape index: {}]  }
   0x1   :  { %2261 = sst [smem:[#allocation18_spill]] %s2245_s1 }
   0x2   :  { %11 = vsyncpa [#allocation3], 0 }
   0x3   :  { %13 = vsyncpa [#allocation3 + $0x1], 0 }
   0x4   :  { %14 = vsyncpa [#allocation6], 0 }
   0x5   :  { %16 = vsyncpa [#allocation6 + $0x1], 0 }
   0x6   :  { %17 = vsyncpa [#allocation4], 0 }
   0x7   :  { %19 = vsyncpa [#allocation4 + $0x1], 0  ;;  %s1604_s21 = smov 0   ;;  %s1606_s22 = smov 0  }
   0x8   :  { %s1608_s23 = smov 0   ;;  %s1610_s24 = smov 0  }
   0x9   :  { %s1612_s25 = smov 0   ;;  %s1614_s26 = smov 0  }
   0xa   :  { %s1616_s27 = smov 0   ;;  %s1618_s28 = smov 0  }
   0xb   :  { %s1620_s29 = smov 0   ;;  %s1622_s30 = smov 0  }
   0xc   :  { %s1624_s7 = smov 0  }
   0xd LB: > { %2262 = sst [smem:[#allocation11_spill]] %s1527_s23  ;;  %s1197_s8 = sadd.s32 4294967295, %s1559_s7   ;;  %s1559_s7 = sphi %s1624_s7, %s25_s7   ;;  %s1555_s30 = sphi %s1622_s30, %s2296_s30   ;;  %s1551_s29 = sphi %s1620_s29, %s2289_s29   ;;  %s1547_s28 = sphi %s1618_s28, %s2295_s28   ;;  %s1543_s27 = sphi %s1616_s27, %s2288_s27   ;;  %s1539_s26 = sphi %s1614_s26, %s2287_s26   ;;  %s1535_s25 = sphi %s1612_s25, %s2294_s25   ;;  %s1531_s24 = sphi %s1610_s24, %s2293_s24   ;;  %s1527_s23 = sphi %s1608_s23, %s2285_s23   ;;  %s1523_s22 = sphi %s1606_s22, %s2292_s22   ;;  %s1519_s21 = sphi %s1604_s21, %s2291_s21  }
   0xe   : > { %2263 = sst [smem:[#allocation12_spill]] %s1539_s26  ;;  %s1198_s9 = sadd.s32 4294967294, %s1559_s7  }
   0xf   : > { %2264 = sst [smem:[#allocation13_spill]] %s1551_s29  ;;  %s34_s10 = sadd.s32 1, %s1551_s29 }
  0x10   : > { %s37_s11 = sadd.s32 1, %s1555_s30  ;;  %p35_p0 = scmp.ge.s32.totalorder %s34_s10, 2 }
  0x11   : > { %s70_s12 = sadd.s32 1, %s1539_s26  ;;  %p77_p1 = scmp.ne.s32.totalorder %s1539_s26, %s1535_s25 }
  0x12   : > { %p78_p2 = scmp.eq.s32.totalorder %s1559_s7, 0  ;;  %s2298_s10 = smov (%p35_p0, %s34_s10), 0 }
  0x13   : > { %2265 = sst [smem:[#allocation14_spill]] %s2298_s10  ;;  %s2300_s11 = smov (!%p35_p0, %s37_s11), %s1555_s30 }
  0x14   : > { %p1668_p3 = por %p78_p2, %p77_p1  ;;  %p83_p4 = scmp.ne.s32.totalorder %s1535_s25, %s1531_s24 }
  0x15   : > { %p39_p5 = scmp.ge.s32.totalorder %s2300_s11, 2  ;;  %p84_p6 = scmp.eq.s32.totalorder %s1197_s8, 0 }
  0x16   : > { %s199_s14 = ssub.s32 %s1551_s29, %s2298_s10  ;;  %s204_s15 = sadd.s32 1, %s1527_s23 }
  0x17   : > { %s2302_s11 = smov (%p39_p5, %s2300_s11), 0  ;;  %p1678_p7 = por %p84_p6, %p83_p4 }
  0x18   : > { %2267 = sst [smem:[#allocation15_spill]] %s2302_s11  ;;  %p214_p8 = scmp.ne.s32.totalorder %s1527_s23, %s1523_s22 }
  0x19   : > { %s2268_s16 = scalar_select %p1678_p7, 1, 0 }
  0x1a   : > { %s67_s17 = ssub.s32 %s1555_s30, %s2302_s11  ;;  %p215_p9 = scmp.eq.s32.totalorder %s1197_s8, 3 }
  0x1b   : > { %p68_p10 = scmp.eq.s32.totalorder %s67_s17, 0  ;;  %s201_s18 = sor.u32 %s199_s14, %s67_s17 }
  0x1c   : > { %p202_p11 = scmp.eq.s32.totalorder %s201_s18, 0  ;;  %p1686_p12 = por %p215_p9, %p214_p8 }
  0x1d   : > { %s1691_s20 = scalar_select %p68_p10, %s1539_s26, %s70_s12  }
  0x1e   : > { %s2269_s19 = scalar_select %p1686_p12, 1, 0 }
  0x1f   : > { %2270 = sst [smem:[#allocation16_spill]] %s1691_s20  ;;  %p220_p13 = scmp.ne.s32.totalorder %s1523_s22, %s1519_s21 }
  0x20   : > { %s1694_s24 = scalar_select %p202_p11, %s1527_s23, %s204_s15  }
  0x21   : > { %p221_p0 = scmp.eq.s32.totalorder %s1198_s9, 3  ;;  %p1244_p1 = scmp.lt.s32.totalorder %s1559_s7, 4 }
  0x22   : > { %2271 = sst [smem:[#allocation17_spill]] %s1694_s24  ;;  %s1704_s8 = sand.u32 1, %s1539_s26  }
  0x23   : > { %p1699_p2 = por %p221_p0, %p220_p13  ;;  %s2254_s14 = sshll.u32 %s1704_s8, 7 }
  0x24   : > { %s2255_s17 = sshll.u32 %s1555_s30, 11  ;;  %s2273_s1 = sld [smem:[#allocation18_spill]] }
  0x25   : > { %s2272_s10 = scalar_select %p1699_p2, 1, 0 }
  0x26   : > { %s251_s9 = scalar_lea.vmem [#allocation2], %s2254_s14  ;;  %p1721_p4 = pnand %p1244_p1, %p1668_p3 }
  0x27   : > { %s258_s11 = sshll.u32 %s251_s9, 4  ;;  %s1717_s11 = int_to_ptr.vmem [resolvable:$true] %s258_s11 }
  0x28   : > { %p1375_p8 = pneg %p1721_p4 }
  0x2a   : > { %s1713_s15 = scalar_lea.hbm %s2273_s1, %s2255_s17  ;;  %s1378_s13 = scalar_lea.hbm %s2273_s1, 4096 }
  0x2b   : > { %s1373_s12 = scalar_lea.hbm %s1713_s15, 2048  ;;  %p1379_p3 = scmp.lt.u32.totalorder %s1713_s15, %s2273_s1 }
  0x2c   : > { %p1374_p6 = scmp.ne.s32.totalorder %s1713_s15, %s1373_s12  ;;  %p1380_p11 = scmp.lt.u32.totalorder %s1378_s13, %s1373_s12 }
  0x2d   : > { %p1382_p0 = scmp.lt.u32.totalorder %s1373_s12, %s1713_s15 }
  0x2e   : > { %p1376_p9 = pnand %p1375_p8, %p1374_p6  ;;  %p1381_p13 = por %p1380_p11, %p1379_p3 }
  0x30   : > { %p1377_p10 = pneg %p1376_p9  ;;  %p1383_p1 = por %p1382_p0, %p1381_p13 }
  0x32   : > { %p1384_p5 = pnand %p1383_p1, %p1377_p10 }
  0x34   : > { %1387 = shalt.err (!%p1384_p5)
}
  0x35   : > { %s1388_s18 = scalar_lea.vmem %s1717_s11, 2048  ;;  %s1561_s14 = smov [#allocation2]  }
  0x36   : > { %p1389_p6 = scmp.ne.s32.totalorder %s1717_s11, %s1388_s18  ;;  %s1393_s9 = sshll.u32 %s1561_s14, 4  ;;  %s1394_s9 = int_to_ptr.vmem [resolvable:$false] %s1393_s9 }
  0x37   : > { %s1395_s20 = scalar_lea.vmem %s1394_s9, 4096  ;;  %p1396_p12 = scmp.lt.s32.totalorder %s1717_s11, %s1394_s9 }
  0x38   : > { %p1391_p9 = pnand %p1389_p6, %p1375_p8  ;;  %p1397_p3 = scmp.lt.s32.totalorder %s1395_s20, %s1388_s18 }
  0x3a   : > { %p1392_p2 = pneg %p1391_p9  ;;  %p1398_p11 = por %p1397_p3, %p1396_p12 }
  0x3c   : > { %p1399_p13 = pnand %p1398_p11, %p1392_p2 }
  0x3e   : > { %1402 = shalt.err (!%p1399_p13)
}
  0x3f   : > { %s2259_s17 = smov 128   ;;  %s1563_s12 = smov 8  }
  0x40   : > { %s2275_s18 = scalar_lea.sflag [#allocation3], %s1704_s8  ;;  %p318_p12 = scmp.lt.s32.totalorder %s1559_s7, 5 }
  0x41   : > { %1236 = dma.hbm_to_vmem [thread:$0]  (!%p1721_p4), %s1713_s15, 2048, %s1717_s11, %s2275_s18, %s2259_s17, %s2259_s17, %s1563_s12  }
  0x42   : > { %s2276_s13 = sshll.u32 %s1555_s30, 11  ;;  %p2277_p2 = scmp.ge.s32.totalorder %s1559_s7, 1 }
  0x43   : > { %s1763_s20 = scalar_lea.hbm %s2247_s3, %s2276_s13  ;;  %s2279_s26 = sshll.u32 %s1704_s8, 7 }
  0x44   : > { %p1767_p5 = pnand %p2277_p2, %p318_p12  ;;  %s281_s24 = scalar_lea.vmem [#allocation5], %s2279_s26 }
  0x45   : > { %s288_s23 = sshll.u32 %s281_s24, 4  ;;  %s278_s11 = scalar_lea.sflag [#allocation6], %s1704_s8  ;;  %s1773_s23 = int_to_ptr.vmem [resolvable:$true] %s288_s23 }
  0x46   : > { %s1403_s15 = scalar_lea.hbm %s1763_s20, 2048  ;;  %s1408_s14 = scalar_lea.hbm %s2247_s3, 4096 }
  0x47   : > { %p1404_p10 = scmp.ne.s32.totalorder %s1763_s20, %s1403_s15  ;;  %p1409_p6 = scmp.lt.u32.totalorder %s1763_s20, %s2247_s3 }
  0x48   : > { %p1410_p9 = scmp.lt.u32.totalorder %s1408_s14, %s1403_s15  ;;  %p1412_p11 = scmp.lt.u32.totalorder %s1403_s15, %s1763_s20 }
  0x49   : > { %p1406_p0 = pnand %p1404_p10, %p1375_p8 }
  0x4a   : > { %p1411_p3 = por %p1410_p9, %p1409_p6 }
  0x4b   : > { %p1407_p1 = pneg %p1406_p0 }
  0x4c   : > { %p1413_p13 = por %p1412_p11, %p1411_p3 }
  0x4e   : > { %p1414_p12 = pnand %p1413_p13, %p1407_p1 }
  0x50   : > { %1417 = shalt.err (!%p1414_p12)
}
  0x51   : > { %s1418_s26 = scalar_lea.vmem %s1773_s23, 2048  ;;  %s1564_s24 = smov [#allocation5]  }
  0x52   : > { %p1419_p2 = scmp.ne.s32.totalorder %s1773_s23, %s1418_s26  ;;  %s1423_s18 = sshll.u32 %s1564_s24, 4  ;;  %s1424_s18 = int_to_ptr.vmem [resolvable:$false] %s1423_s18 }
  0x53   : > { %s1425_s17 = scalar_lea.vmem %s1424_s18, 4096  ;;  %p1426_p7 = scmp.lt.s32.totalorder %s1773_s23, %s1424_s18 }
  0x54   : > { %p1421_p10 = pnand %p1419_p2, %p1375_p8  ;;  %p1427_p6 = scmp.lt.s32.totalorder %s1425_s17, %s1418_s26 }
  0x56   : > { %p1422_p0 = pneg %p1421_p10  ;;  %p1428_p9 = por %p1427_p6, %p1426_p7 }
  0x58   : > { %p1429_p3 = pnand %p1428_p9, %p1422_p0 }
  0x5a   : > { %1432 = shalt.err (!%p1429_p3)
}
  0x5b   : > { %s2280_s15 = smov 128   ;;  %322 = sbr.rel (%p1767_p5) target bundleno = 570 (0x23a), region = 44 }
  0x5c   : > { %1239 = dma.hbm_to_vmem [thread:$0]  (!%p1721_p4), %s1763_s20, 2048, %s1773_s23, %s278_s11, %s2280_s15, %s2280_s15, %s1563_s12  }
  0x5d   : > { %s324_s13 = sand.u32 (!%p1767_p5), 1, %s1535_s25   ;;  %p2281_p7 = scmp.ne.s32.totalorder (!%p1767_p5), %s2268_s16, 0 }
  0x5e   : > { %s1208_s14 = sshll.u32 (!%p1767_p5), %s324_s13, 7  ;;  %s325_s9 = scalar_lea.sflag (!%p1767_p5), [#allocation3], %s324_s13 }
  0x5f   : > { %s1807_s26 = scalar_lea.vmem (!%p1767_p5), [#allocation2], %s1208_s14 }
  0x62   : > { %1506 = dma.done.wait (%p2281_p7), %s325_s9, 2048  }
  0x63   : > { %1508 = vsyncadd (%p2281_p7), %s325_s9, 4294965248  ;;  %s334_s29 = scalar_lea.sflag [#allocation6], %s324_s13  ;;  %s1813_s8 = scalar_lea.vmem [#allocation5], %s1208_s14 }
  0x64   : > { %1510 = dma.done.wait (%p2281_p7), %s334_s29, 2048  }
  0x65   : > { %1512 = vsyncadd (%p2281_p7), %s334_s29, 4294965248  ;;  %p393_p4 = scmp.lt.s32.totalorder %s1543_s27, 1  ;;  %s1821_s1 = sshll.u32 %s1547_s28, 4  ;;  %v599_v15 = vld [vmem:[%s1807_s26 + $0x8] sm:$0xff]  ;;  %v598_v18 = vld [vmem:[%s1807_s26] sm:$0xff]  ;;  %v1565_v47 = vmov 0  }
  0x66   : > { %p398_p8 = scmp.lt.s32.totalorder %s1821_s1, 31  ;;  %v601_v21 = vld [vmem:[%s1807_s26 + $0x18] sm:$0xff]  ;;  %v600_v22 = vld [vmem:[%s1807_s26 + $0x10] sm:$0xff]  ;;  %v603_v25 = vld [vmem:[%s1807_s26 + $0x28] sm:$0xff]  ;;  %1340 = vset.pattern.permute.xlu1 %v1565_v47  ;;  %1339 = vset.pattern.permute.xlu0 %v1565_v47  ;;  %s1221_s16 = sshll.u32 %s1543_s27, 5 }
  0x67   : > { %s1825_s23 = scalar_select %p393_p4, %s1543_s27, 1  ;;  %v602_v26 = vld [vmem:[%s1807_s26 + $0x20] sm:$0xff]  ;;  %v605_v29 = vld [vmem:[%s1807_s26 + $0x38] sm:$0xff]  ;;  %v604_v30 = vld [vmem:[%s1807_s26 + $0x30] sm:$0xff] }
  0x68   : > { %s1828_s12 = scalar_select %p398_p8, %s1821_s1, 31  ;;  %v607_v33 = vld [vmem:[%s1807_s26 + $0x48] sm:$0xff]  ;;  %v606_v34 = vld [vmem:[%s1807_s26 + $0x40] sm:$0xff]  ;;  %v609_v37 = vld [vmem:[%s1807_s26 + $0x58] sm:$0xff] }
  0x69   : > { %s1216_s20 = sshll.u32 %s1825_s23, 5  ;;  %s395_s13 = scalar_lea.vmem %s2244_s0, %s1825_s23  ;;  %v608_v38 = vld [vmem:[%s1807_s26 + $0x50] sm:$0xff]  ;;  %v611_v41 = vld [vmem:[%s1807_s26 + $0x68] sm:$0xff]  ;;  %v610_v42 = vld [vmem:[%s1807_s26 + $0x60] sm:$0xff] }
  0x6a   : > { %s416_s11 = sadd.s32 %s1216_s20, %s1828_s12  ;;  %v1895_v14 = vld [vmem:[%s395_s13] ss:$0 sm:$0xff]  ;;  %v613_v45 = vld [vmem:[%s1807_s26 + $0x78] sm:$0xff]  ;;  %v612_v46 = vld [vmem:[%s1807_s26 + $0x70] sm:$0xff]  ;;  %s1212_s14 = sshll.u32 %s1828_s12, 3 }
  0x6b   : > { %s1217_s24 = sshll.u32 %s416_s11, 3  ;;  %v621_v19 = vmul.f32 %v1895_v14, %v599_v15  ;;  %v620_v20 = vmul.f32 %v1895_v14, %v598_v18  ;;  %v623_v23 = vmul.f32 %v1895_v14, %v601_v21  ;;  %v622_v24 = vmul.f32 %v1895_v14, %v600_v22  ;;  %v701_v50 = vld [vmem:[%s1813_s8 + $0x8] sm:$0xff]  ;;  %v700_v51 = vld [vmem:[%s1813_s8] sm:$0xff]  ;;  %v703_v54 = vld [vmem:[%s1813_s8 + $0x18] sm:$0xff]  ;;  %s2054_s29 = scalar_lea.vmem %s2246_s2, %s1212_s14 }
  0x6c   : > { %s1835_s17 = scalar_lea.vmem %s2249_s5, %s1217_s24  ;;  %v625_v27 = vmul.f32 %v1895_v14, %v603_v25  ;;  %v624_v28 = vmul.f32 %v1895_v14, %v602_v26  ;;  %v627_v31 = vmul.f32 %v1895_v14, %v605_v29  ;;  %v626_v32 = vmul.f32 %v1895_v14, %v604_v30  ;;  %v702_v55 = vld [vmem:[%s1813_s8 + $0x10] sm:$0xff]  ;;  %v705_v58 = vld [vmem:[%s1813_s8 + $0x28] sm:$0xff]  ;;  %v704_v59 = vld [vmem:[%s1813_s8 + $0x20] sm:$0xff]  ;;  %s2073_s20 = scalar_lea.vmem %s2248_s4, %s1212_s14 }
  0x6d   : > { %v1838_v0 = vld [vmem:[%s1835_s17] sm:$0xff]  ;;  %v1841_v1 = vld [vmem:[%s1835_s17 + $0x10] sm:$0xff]  ;;  %v1846_v2 = vld [vmem:[%s1835_s17 + $0x8] sm:$0xff]  ;;  %v629_v35 = vmul.f32 %v1895_v14, %v607_v33  ;;  %v628_v36 = vmul.f32 %v1895_v14, %v606_v34  ;;  %v631_v39 = vmul.f32 %v1895_v14, %v609_v37  ;;  %v630_v40 = vmul.f32 %v1895_v14, %v608_v38  ;;  %s390_s12 = sand.u32 1, %s1523_s22   ;;  %s1033_s18 = sadd.s32 %s1221_s16, %s1821_s1 }
  0x6e   : > { %437 = vadd.xlane.f32.xlu0 %v1838_v0  ;;  %441 = vadd.xlane.f32.xlu1 %v1841_v1  ;;  %v1849_v3 = vld [vmem:[%s1835_s17 + $0x18] sm:$0xff]  ;;  %v1854_v4 = vld [vmem:[%s1835_s17 + $0x20] sm:$0xff]  ;;  %v1857_v5 = vld [vmem:[%s1835_s17 + $0x28] sm:$0xff]  ;;  %v633_v43 = vmul.f32 %v1895_v14, %v611_v41  ;;  %v632_v44 = vmul.f32 %v1895_v14, %v610_v42  ;;  %v635_v48 = vmul.f32 %v1895_v14, %v613_v45  ;;  %s1210_s11 = sshll.u32 %s390_s12, 7  ;;  %s2183_s1 = scalar_lea.sflag [#allocation4], %s390_s12 }
  0x6f   : > { %v1862_v6 = vld [vmem:[%s1835_s17 + $0x30] sm:$0xff]  ;;  %v1865_v7 = vld [vmem:[%s1835_s17 + $0x38] sm:$0xff]  ;;  %v1870_v8 = vld [vmem:[%s1835_s17 + $0x40] sm:$0xff]  ;;  %v634_v49 = vmul.f32 %v1895_v14, %v612_v46  ;;  %v717_v52 = vmul.f32 %v1895_v14, %v701_v50  ;;  %v716_v53 = vmul.f32 %v1895_v14, %v700_v51  ;;  %v719_v56 = vmul.f32 %v1895_v14, %v703_v54  ;;  %s2132_s24 = scalar_lea.vmem [#allocation7], %s1210_s11  ;;  %p2282_p1 = scmp.ne.s32.totalorder %s2269_s19, 0 }
  0x70   : > { %v1873_v9 = vld [vmem:[%s1835_s17 + $0x48] sm:$0xff]  ;;  %v1878_v10 = vld [vmem:[%s1835_s17 + $0x50] sm:$0xff]  ;;  %v1881_v11 = vld [vmem:[%s1835_s17 + $0x58] sm:$0xff]  ;;  %v718_v57 = vmul.f32 %v1895_v14, %v702_v55  ;;  %v721_v60 = vmul.f32 %v1895_v14, %v705_v58  ;;  %v720_v61 = vmul.f32 %v1895_v14, %v704_v59  ;;  %s1036_s27 = sshll.u32 %s2132_s24, 4  ;;  %s1566_s9 = smov [#allocation7]   ;;  %s2178_s27 = int_to_ptr.vmem [resolvable:$true] %s1036_s27 }
  0x71   : > { %v1890_v12 = vld [vmem:[%s1835_s17 + $0x60] sm:$0xff]  ;;  %v1893_v13 = vld [vmem:[%s1835_s17 + $0x68] sm:$0xff]  ;;  %v1901_v16 = vld [vmem:[%s1835_s17 + $0x70] sm:$0xff]  ;;  %s1433_s14 = scalar_lea.vmem %s2178_s27, 2048  ;;  %s1437_s26 = sshll.u32 %s1566_s9, 4  ;;  %s1438_s26 = int_to_ptr.vmem [resolvable:$false] %s1437_s26 }
  0x72   : > { %439 = vadd.xlane.f32.xlu0 %v1846_v2  ;;  %443 = vadd.xlane.f32.xlu1 %v1849_v3  ;;  %v1904_v17 = vld [vmem:[%s1835_s17 + $0x78] sm:$0xff]  ;;  %v706_v63 = vld [vmem:[%s1813_s8 + $0x30] sm:$0xff]  ;;  %s1222_s17 = sshll.u32 %s1033_s18, 7  ;;  %p1434_p5 = scmp.ne.s32.totalorder %s2178_s27, %s1433_s14 }
  0x73   : > { %v707_v62 = vld [vmem:[%s1813_s8 + $0x38] sm:$0xff]  ;;  %v722_v18 = vmul.f32 %v1895_v14, %v706_v63  ;;  %s2175_s13 = scalar_lea.hbm %s2250_s6, %s1222_s17  ;;  %p1440_p12 = scmp.lt.s32.totalorder %s2178_s27, %s1438_s26 }
  0x74   : > { %v723_v15 = vmul.f32 %v1895_v14, %v707_v62  ;;  %p1435_p11 = pnand %p1434_p5, %p2282_p1 }
  0x76   : > { %445 = vadd.xlane.f32.xlu0 %v1854_v4  ;;  %447 = vadd.xlane.f32.xlu1 %v1857_v5  ;;  %p1436_p13 = pneg %p1435_p11 }
  0x7a   : > { %449 = vadd.xlane.f32.xlu0 %v1862_v6  ;;  %451 = vadd.xlane.f32.xlu1 %v1865_v7 }
  0x7e   : > { %453 = vadd.xlane.f32.xlu0 %v1870_v8  ;;  %455 = vadd.xlane.f32.xlu1 %v1873_v9 }
  0x82   : > { %457 = vadd.xlane.f32.xlu0 %v1878_v10  ;;  %459 = vadd.xlane.f32.xlu1 %v1881_v11 }
  0x86   : > { %461 = vadd.xlane.f32.xlu0 %v1890_v12  ;;  %463 = vadd.xlane.f32.xlu1 %v1893_v13 }
  0x8a   : > { %465 = vadd.xlane.f32.xlu0 %v1901_v16  ;;  %467 = vadd.xlane.f32.xlu1 %v1904_v17 }
  0x8e   : > { %638 = vadd.xlane.f32.xlu1 %v621_v19  ;;  %636 = vadd.xlane.f32.xlu0 %v620_v20  ;;  %v709_v19 = vld [vmem:[%s1813_s8 + $0x48] sm:$0xff]  ;;  %v708_v20 = vld [vmem:[%s1813_s8 + $0x40] sm:$0xff] }
  0x8f   : > { %v725_v21 = vmul.f32 %v1895_v14, %v709_v19  ;;  %v724_v22 = vmul.f32 %v1895_v14, %v708_v20 }
  0x92   : > { %642 = vadd.xlane.f32.xlu1 %v623_v23  ;;  %640 = vadd.xlane.f32.xlu0 %v622_v24  ;;  %v711_v23 = vld [vmem:[%s1813_s8 + $0x58] sm:$0xff]  ;;  %v710_v24 = vld [vmem:[%s1813_s8 + $0x50] sm:$0xff] }
  0x93   : > { %v727_v25 = vmul.f32 %v1895_v14, %v711_v23  ;;  %v726_v26 = vmul.f32 %v1895_v14, %v710_v24 }
  0x96   : > { %646 = vadd.xlane.f32.xlu1 %v625_v27  ;;  %644 = vadd.xlane.f32.xlu0 %v624_v28  ;;  %v713_v27 = vld [vmem:[%s1813_s8 + $0x68] sm:$0xff]  ;;  %v712_v28 = vld [vmem:[%s1813_s8 + $0x60] sm:$0xff] }
  0x97   : > { %v729_v29 = vmul.f32 %v1895_v14, %v713_v27  ;;  %v728_v30 = vmul.f32 %v1895_v14, %v712_v28 }
  0x9a   : > { %650 = vadd.xlane.f32.xlu1 %v627_v31  ;;  %648 = vadd.xlane.f32.xlu0 %v626_v32  ;;  %v715_v31 = vld [vmem:[%s1813_s8 + $0x78] sm:$0xff]  ;;  %v714_v32 = vld [vmem:[%s1813_s8 + $0x70] sm:$0xff] }
  0x9b   : > { %v731_v33 = vmul.f32 %v1895_v14, %v715_v31  ;;  %v730_v34 = vmul.f32 %v1895_v14, %v714_v32 }
  0x9e   : > { %654 = vadd.xlane.f32.xlu1 %v629_v35  ;;  %652 = vadd.xlane.f32.xlu0 %v628_v36 }
  0xa2   : > { %658 = vadd.xlane.f32.xlu1 %v631_v39  ;;  %656 = vadd.xlane.f32.xlu0 %v630_v40 }
  0xa6   : > { %662 = vadd.xlane.f32.xlu1 %v633_v43  ;;  %660 = vadd.xlane.f32.xlu0 %v632_v44 }
  0xaa   : > { %666 = vadd.xlane.f32.xlu1 %v635_v48  ;;  %664 = vadd.xlane.f32.xlu0 %v634_v49 }
  0xae   : > { %734 = vadd.xlane.f32.xlu1 %v717_v52  ;;  %732 = vadd.xlane.f32.xlu0 %v716_v53 }
  0xb2   : > { %738 = vadd.xlane.f32.xlu1 %v719_v56  ;;  %736 = vadd.xlane.f32.xlu0 %v718_v57 }
  0xb6   : > { %742 = vadd.xlane.f32.xlu1 %v721_v60  ;;  %740 = vadd.xlane.f32.xlu0 %v720_v61 }
  0xba   : > { %746 = vadd.xlane.f32.xlu1 %v723_v15  ;;  %744 = vadd.xlane.f32.xlu0 %v722_v18 }
  0xbe   : > { %750 = vadd.xlane.f32.xlu1 %v725_v21  ;;  %748 = vadd.xlane.f32.xlu0 %v724_v22 }
  0xc2   : > { %754 = vadd.xlane.f32.xlu1 %v727_v25  ;;  %752 = vadd.xlane.f32.xlu0 %v726_v26 }
  0xc6   : > { %758 = vadd.xlane.f32.xlu1 %v729_v29  ;;  %756 = vadd.xlane.f32.xlu0 %v728_v30 }
  0xca   : > { %762 = vadd.xlane.f32.xlu1 %v731_v33  ;;  %760 = vadd.xlane.f32.xlu0 %v730_v34 }
  0xfb   : > { %v438_v35 = vpop.xlane.xlu0 %437  ;;  %v442_v36 = vpop.xlane.xlu1 %441 }
  0xfc   : > { %v469_v37 = vmul.f32 0.0078125, %v438_v35  ;;  %v471_v38 = vmul.f32 0.0078125, %v442_v36 }
  0xfe   : > { %v1972_v39 = vsub.f32 %v1838_v0, %v469_v37  ;;  %v1975_v40 = vsub.f32 %v1841_v1, %v471_v38  ;;  %v669_v38 = vld [vmem:[%s2054_s29 + $0x8] sm:$0xff] }
  0xff   : > { %v440_v41 = vpop.xlane.xlu0 %439  ;;  %v444_v42 = vpop.xlane.xlu1 %443 }
 0x100   : > { %v470_v43 = vmul.f32 0.0078125, %v440_v41  ;;  %v501_v44 = vmul.f32 %v1972_v39, %v1972_v39  ;;  %v472_v45 = vmul.f32 0.0078125, %v444_v42  ;;  %v503_v46 = vmul.f32 %v1975_v40, %v1975_v40 }
 0x102   : > { %v1980_v14 = vsub.f32 %v1846_v2, %v470_v43  ;;  %517 = vadd.xlane.f32.xlu0 %v501_v44  ;;  %v1985_v0 = vsub.f32 %v1849_v3, %v472_v45  ;;  %v670_v43 = vld [vmem:[%s2054_s29 + $0x10] sm:$0xff]  ;;  %v668_v45 = vld [vmem:[%s2054_s29] sm:$0xff] }
 0x103   : > { %v446_v47 = vpop.xlane.xlu0 %445  ;;  %v448_v1 = vpop.xlane.xlu1 %447 }
 0x104   : > { %v473_v48 = vmul.f32 0.0078125, %v446_v47  ;;  %v502_v49 = vmul.f32 %v1980_v14, %v1980_v14  ;;  %v474_v50 = vmul.f32 0.0078125, %v448_v1  ;;  %v504_v52 = vmul.f32 %v1985_v0, %v1985_v0  ;;  %v671_v1 = vld [vmem:[%s2054_s29 + $0x18] sm:$0xff] }
 0x106   : > { %v1990_v51 = vsub.f32 %v1854_v4, %v473_v48  ;;  %521 = vadd.xlane.f32.xlu0 %v503_v46  ;;  %519 = vadd.xlane.f32.xlu1 %v502_v49  ;;  %v1993_v2 = vsub.f32 %v1857_v5, %v474_v50  ;;  %v677_v48 = vld [vmem:[%s2054_s29 + $0x48] sm:$0xff] }
 0x107   : > { %v450_v3 = vpop.xlane.xlu0 %449  ;;  %v452_v53 = vpop.xlane.xlu1 %451 }
 0x108   : > { %v475_v54 = vmul.f32 0.0078125, %v450_v3  ;;  %v505_v55 = vmul.f32 %v1990_v51, %v1990_v51  ;;  %v476_v56 = vmul.f32 0.0078125, %v452_v53  ;;  %v506_v5 = vmul.f32 %v1993_v2, %v1993_v2  ;;  %v672_v53 = vld [vmem:[%s2054_s29 + $0x20] sm:$0xff] }
 0x10a   : > { %v2000_v57 = vsub.f32 %v1862_v6, %v475_v54  ;;  %523 = vadd.xlane.f32.xlu1 %v504_v52  ;;  %525 = vadd.xlane.f32.xlu0 %v505_v55  ;;  %v2003_v4 = vsub.f32 %v1865_v7, %v476_v56  ;;  %v679_v55 = vld [vmem:[%s2054_s29 + $0x58] sm:$0xff] }
 0x10b   : > { %v454_v58 = vpop.xlane.xlu0 %453  ;;  %v456_v59 = vpop.xlane.xlu1 %455 }
 0x10c   : > { %v477_v60 = vmul.f32 0.0078125, %v454_v58  ;;  %v507_v61 = vmul.f32 %v2000_v57, %v2000_v57  ;;  %v478_v62 = vmul.f32 0.0078125, %v456_v59  ;;  %v508_v7 = vmul.f32 %v2003_v4, %v2003_v4  ;;  %v673_v58 = vld [vmem:[%s2054_s29 + $0x28] sm:$0xff] }
 0x10e   : > { %v2010_v63 = vsub.f32 %v1870_v8, %v477_v60  ;;  %527 = vadd.xlane.f32.xlu1 %v506_v5  ;;  %529 = vadd.xlane.f32.xlu0 %v507_v61  ;;  %v2013_v6 = vsub.f32 %v1873_v9, %v478_v62  ;;  %v681_v60 = vld [vmem:[%s2054_s29 + $0x68] sm:$0xff] }
 0x10f   : > { %v458_v15 = vpop.xlane.xlu0 %457  ;;  %v460_v18 = vpop.xlane.xlu1 %459 }
 0x110   : > { %v479_v19 = vmul.f32 0.0078125, %v458_v15  ;;  %v509_v20 = vmul.f32 %v2010_v63, %v2010_v63  ;;  %v480_v21 = vmul.f32 0.0078125, %v460_v18  ;;  %v510_v9 = vmul.f32 %v2013_v6, %v2013_v6  ;;  %v683_v15 = vld [vmem:[%s2054_s29 + $0x78] sm:$0xff] }
 0x112   : > { %v2020_v22 = vsub.f32 %v1878_v10, %v479_v19  ;;  %531 = vadd.xlane.f32.xlu1 %v508_v7  ;;  %533 = vadd.xlane.f32.xlu0 %v509_v20  ;;  %v2023_v8 = vsub.f32 %v1881_v11, %v480_v21  ;;  %v765_v20 = vld [vmem:[%s2073_s20 + $0x8] sm:$0xff] }
 0x113   : > { %v462_v23 = vpop.xlane.xlu0 %461  ;;  %v464_v24 = vpop.xlane.xlu1 %463 }
 0x114   : > { %v481_v25 = vmul.f32 0.0078125, %v462_v23  ;;  %v511_v26 = vmul.f32 %v2020_v22, %v2020_v22  ;;  %v482_v27 = vmul.f32 0.0078125, %v464_v24  ;;  %v512_v11 = vmul.f32 %v2023_v8, %v2023_v8  ;;  %v767_v24 = vld [vmem:[%s2073_s20 + $0x18] sm:$0xff] }
 0x116   : > { %v2030_v28 = vsub.f32 %v1890_v12, %v481_v25  ;;  %535 = vadd.xlane.f32.xlu1 %v510_v9  ;;  %537 = vadd.xlane.f32.xlu0 %v511_v26  ;;  %v2033_v10 = vsub.f32 %v1893_v13, %v482_v27 }
 0x117   : > { %v466_v29 = vpop.xlane.xlu0 %465  ;;  %v2037_v30 = vpop.xlane.xlu1 %467 }
 0x118   : > { %v483_v31 = vmul.f32 0.0078125, %v466_v29  ;;  %v513_v32 = vmul.f32 %v2030_v28, %v2030_v28  ;;  %v514_v13 = vmul.f32 %v2033_v10, %v2033_v10 }
 0x11a   : > { %v2042_v12 = vsub.f32 %v1901_v16, %v483_v31  ;;  %539 = vadd.xlane.f32.xlu1 %v512_v11  ;;  %541 = vadd.xlane.f32.xlu0 %v513_v32  ;;  %v769_v11 = vld [vmem:[%s2073_s20 + $0x28] sm:$0xff]  ;;  %v771_v31 = vld [vmem:[%s2073_s20 + $0x38] sm:$0xff] }
 0x11b   : > { %v639_v33 = vpop.xlane.xlu1 %638  ;;  %v637_v16 = vpop.xlane.xlu0 %636 }
 0x11c   : > { %v515_v34 = vmul.f32 %v2042_v12, %v2042_v12  ;;  %v685_v41 = vadd.f32 %v669_v38, %v639_v33  ;;  %v684_v49 = vadd.f32 %v668_v45, %v637_v16  ;;  %v775_v38 = vld [vmem:[%s2073_s20 + $0x58] sm:$0xff] }
 0x11e   : > { %543 = vadd.xlane.f32.xlu1 %v514_v13  ;;  %545 = vadd.xlane.f32.xlu0 %v515_v34  ;;  %v773_v34 = vld [vmem:[%s2073_s20 + $0x48] sm:$0xff] }
 0x11f   : > { %v643_v35 = vpop.xlane.xlu1 %642  ;;  %v641_v44 = vpop.xlane.xlu0 %640 }
 0x120   : > { %v686_v46 = vadd.f32 %v670_v43, %v641_v44  ;;  %v687_v50 = vadd.f32 %v671_v1, %v643_v35  ;;  %v777_v43 = vld [vmem:[%s2073_s20 + $0x68] sm:$0xff]  ;;  %v779_v1 = vld [vmem:[%s2073_s20 + $0x78] sm:$0xff] }
 0x123   : > { %v647_v36 = vpop.xlane.xlu1 %646  ;;  %v645_v54 = vpop.xlane.xlu0 %644 }
 0x124   : > { %v688_v56 = vadd.f32 %v672_v53, %v645_v54  ;;  %v689_v61 = vadd.f32 %v673_v58, %v647_v36  ;;  %v674_v53 = vld [vmem:[%s2054_s29 + $0x30] sm:$0xff] }
 0x127   : > { %v2056_v37 = vpop.xlane.xlu1 %650  ;;  %v649_v21 = vpop.xlane.xlu0 %648 }
 0x128   : > { %v690_v54 = vadd.f32 %v674_v53, %v649_v21  ;;  %v764_v21 = vld [vmem:[%s2073_s20] sm:$0xff] }
 0x12b   : > { %v655_v42 = vpop.xlane.xlu1 %654  ;;  %v653_v26 = vpop.xlane.xlu0 %652 }
 0x12c   : > { %v693_v3 = vadd.f32 %v677_v48, %v655_v42  ;;  %v484_v42 = vmul.f32 0.0078125, %v2037_v30 }
 0x12f   : > { %819 = vperm.xlu1 %1340, %v685_v41   ;;  %v659_v47 = vpop.xlane.xlu1 %658  ;;  %v657_v13 = vpop.xlane.xlu0 %656 }
 0x130   : > { %v695_v59 = vadd.f32 %v679_v55, %v659_v47  ;;  %v2084_v47 = vsub.f32 %v1904_v17, %v484_v42  ;;  %v675_v55 = vld [vmem:[%s2054_s29 + $0x38] sm:$0xff] }
 0x132   : > { %v516_v30 = vmul.f32 %v2084_v47, %v2084_v47 }
 0x133   : > { %824 = vperm.xlu1 %1340, %v686_v46   ;;  %v663_v52 = vpop.xlane.xlu1 %662  ;;  %v661_v36 = vpop.xlane.xlu0 %660 }
 0x134   : > { %814 = vperm.xlu0 %1339, %v684_v49   ;;  %v697_v7 = vadd.f32 %v681_v60, %v663_v52  ;;  %v678_v60 = vld [vmem:[%s2054_s29 + $0x50] sm:$0xff] }
 0x137   : > { %829 = vperm.xlu1 %1340, %v687_v50   ;;  %v667_v5 = vpop.xlane.xlu1 %666  ;;  %v665_v45 = vpop.xlane.xlu0 %664 }
 0x138   : > { %859 = vperm.xlu0 %1339, %v693_v3   ;;  %v699_v19 = vadd.f32 %v683_v15, %v667_v5  ;;  %v691_v5 = vadd.f32 %v675_v55, %v2056_v37 }
 0x13b   : > { %834 = vperm.xlu1 %1340, %v688_v56   ;;  %v735_v62 = vpop.xlane.xlu1 %734  ;;  %v733_v49 = vpop.xlane.xlu0 %732  ;;  %v676_v56 = vld [vmem:[%s2054_s29 + $0x40] sm:$0xff] }
 0x13c   : > { %869 = vperm.xlu0 %1339, %v695_v59   ;;  %v781_v23 = vadd.f32 %v765_v20, %v735_v62  ;;  %v692_v59 = vadd.f32 %v676_v56, %v653_v26  ;;  %v680_v62 = vld [vmem:[%s2054_s29 + $0x60] sm:$0xff]  ;;  %v780_v37 = vadd.f32 %v764_v21, %v733_v49  ;;  %v778_v49 = vld [vmem:[%s2073_s20 + $0x70] sm:$0xff] }
 0x13d   : > { %v696_v15 = vadd.f32 %v680_v62, %v661_v36  ;;  %v774_v36 = vld [vmem:[%s2073_s20 + $0x50] sm:$0xff] }
 0x13f   : > { %839 = vperm.xlu1 %1340, %v689_v61   ;;  %v739_v18 = vpop.xlane.xlu1 %738  ;;  %v737_v52 = vpop.xlane.xlu0 %736  ;;  %v694_v61 = vadd.f32 %v678_v60, %v657_v13  ;;  %v772_v13 = vld [vmem:[%s2073_s20 + $0x40] sm:$0xff] }
 0x140   : > { %879 = vperm.xlu0 %1339, %v697_v7   ;;  %v783_v27 = vadd.f32 %v767_v24, %v739_v18  ;;  %v682_v18 = vld [vmem:[%s2054_s29 + $0x70] sm:$0xff]  ;;  %s1439_s29 = scalar_lea.vmem %s1438_s26, 4096 }
 0x141   : > { %v698_v20 = vadd.f32 %v682_v18, %v665_v45  ;;  %p1441_p2 = scmp.lt.s32.totalorder %s1439_s29, %s1433_s14 }
 0x143   : > { %v743_v9 = vpop.xlane.xlu1 %742  ;;  %v741_v3 = vpop.xlane.xlu0 %740  ;;  %p1442_p10 = por %p1441_p2, %p1440_p12 }
 0x144   : > { %889 = vperm.xlu0 %1339, %v699_v19   ;;  %v785_v29 = vadd.f32 %v769_v11, %v743_v9  ;;  %v766_v9 = vld [vmem:[%s2073_s20 + $0x10] sm:$0xff] }
 0x145   : > { %v782_v24 = vadd.f32 %v766_v9, %v737_v52  ;;  %v770_v11 = vld [vmem:[%s2073_s20 + $0x30] sm:$0xff]  ;;  %p1443_p0 = pnand %p1442_p10, %p1436_p13 }
 0x147   : > { %v747_v25 = vpop.xlane.xlu1 %746  ;;  %v745_v17 = vpop.xlane.xlu0 %744 }
 0x148   : > { %915 = vperm.xlu0 %1339, %v781_v23   ;;  %v787_v33 = vadd.f32 %v771_v31, %v747_v25  ;;  %v768_v25 = vld [vmem:[%s2073_s20 + $0x20] sm:$0xff] }
 0x14b   : > { %v751_v32 = vpop.xlane.xlu1 %750  ;;  %v749_v58 = vpop.xlane.xlu0 %748 }
 0x14c   : > { %925 = vperm.xlu0 %1339, %v783_v27   ;;  %v789_v16 = vadd.f32 %v773_v34, %v751_v32  ;;  %v784_v27 = vadd.f32 %v768_v25, %v741_v3  ;;  %v786_v32 = vadd.f32 %v770_v11, %v745_v17 }
 0x14f   : > { %v755_v35 = vpop.xlane.xlu1 %754  ;;  %v753_v7 = vpop.xlane.xlu0 %752 }
 0x150   : > { %935 = vperm.xlu0 %1339, %v785_v29   ;;  %v791_v41 = vadd.f32 %v775_v38, %v755_v35  ;;  %v788_v35 = vadd.f32 %v772_v13, %v749_v58 }
 0x153   : > { %v759_v44 = vpop.xlane.xlu1 %758  ;;  %v757_v19 = vpop.xlane.xlu0 %756 }
 0x154   : > { %945 = vperm.xlu0 %1339, %v787_v33   ;;  %v793_v46 = vadd.f32 %v777_v43, %v759_v44  ;;  %v776_v43 = vld [vmem:[%s2073_s20 + $0x60] sm:$0xff] }
 0x157   : > { %v763_v48 = vpop.xlane.xlu1 %762  ;;  %v761_v23 = vpop.xlane.xlu0 %760 }
 0x158   : > { %955 = vperm.xlu0 %1339, %v789_v16   ;;  %v795_v50 = vadd.f32 %v779_v1, %v763_v48  ;;  %v792_v1 = vadd.f32 %v776_v43, %v757_v19  ;;  %v794_v3 = vadd.f32 %v778_v49, %v761_v23 }
 0x15c   : > { %965 = vperm.xlu0 %1339, %v791_v41   ;;  %v790_v41 = vadd.f32 %v774_v36, %v753_v7 }
 0x160   : > { %975 = vperm.xlu0 %1339, %v793_v46  }
 0x163   : > { %547 = vadd.xlane.f32.xlu1 %v516_v30 }
 0x164   : > { %985 = vperm.xlu0 %1339, %v795_v50  }
 0x174   : > { %844 = vperm.xlu1 %1340, %v690_v54  }
 0x178   : > { %849 = vperm.xlu1 %1340, %v691_v5  }
 0x17c   : > { %854 = vperm.xlu1 %1340, %v692_v59  }
 0x180   : > { %864 = vperm.xlu1 %1340, %v694_v61  }
 0x184   : > { %874 = vperm.xlu1 %1340, %v696_v15  }
 0x188   : > { %884 = vperm.xlu1 %1340, %v698_v20  }
 0x18c   : > { %910 = vperm.xlu1 %1340, %v780_v37  }
 0x18f   : > { %v518_v26 = vpop.xlane.xlu0 %517 }
 0x190   : > { %920 = vperm.xlu1 %1340, %v782_v24   ;;  %v549_v42 = vmul.f32 0.0078125, %v518_v26 }
 0x192   : > { %v565_v48 = vadd.f32 1e-08, %v549_v42 }
 0x193   : > { %v520_v29 = vpop.xlane.xlu1 %519  ;;  %v522_v31 = vpop.xlane.xlu0 %521 }
 0x194   : > { %930 = vperm.xlu1 %1340, %v784_v27   ;;  %v551_v44 = vmul.f32 0.0078125, %v522_v31  ;;  %1341 = vrsqrt.f32 %v565_v48  ;;  %v550_v59 = vmul.f32 0.0078125, %v520_v29 }
 0x196   : > { %v567_v50 = vadd.f32 1e-08, %v551_v44  ;;  %v566_v15 = vadd.f32 1e-08, %v550_v59 }
 0x197   : > { %v524_v33 = vpop.xlane.xlu1 %523  ;;  %v526_v34 = vpop.xlane.xlu0 %525 }
 0x198   : > { %940 = vperm.xlu1 %1340, %v786_v32   ;;  %1343 = vrsqrt.f32 %v567_v50  ;;  %v553_v53 = vmul.f32 0.0078125, %v526_v34  ;;  %v552_v18 = vmul.f32 0.0078125, %v524_v33 }
 0x19a   : > { %v569_v17 = vadd.f32 1e-08, %v553_v53  ;;  %v568_v23 = vadd.f32 1e-08, %v552_v18 }
 0x19b   : > { %v528_v16 = vpop.xlane.xlu1 %527  ;;  %v2102_v38 = vpop.xlane.xlu0 %529 }
 0x19c   : > { %950 = vperm.xlu1 %1340, %v788_v35   ;;  %1345 = vrsqrt.f32 %v569_v17  ;;  %v554_v24 = vmul.f32 0.0078125, %v528_v16 }
 0x19d   : > { %1347 = vrsqrt.f32 %v566_v15 }
 0x19e   : > { %v1342_v5 = vpop.eup %1341  ;;  %1349 = vrsqrt.f32 %v568_v23 }
 0x19f   : > { %v2105_v45 = vpop.xlane.xlu1 %531  ;;  %v2107_v46 = vpop.xlane.xlu0 %533  ;;  %v796_v7 = vmul.f32 %v1342_v5, %v1972_v39  ;;  %v570_v39 = vadd.f32 1e-08, %v554_v24 }
 0x1a0   : > { %960 = vperm.xlu1 %1340, %v790_v41  }
 0x1a1   : > { %1351 = vrsqrt.f32 %v570_v39 }
 0x1a2   : > { %v1344_v58 = vpop.eup %1343 }
 0x1a3   : > { %v536_v30 = vpop.xlane.xlu1 %535  ;;  %v2110_v52 = vpop.xlane.xlu0 %537  ;;  %v798_v62 = vmul.f32 %v1344_v58, %v1975_v40 }
 0x1a4   : > { %970 = vperm.xlu1 %1340, %v792_v1   ;;  %v558_v31 = vmul.f32 0.0078125, %v536_v30 }
 0x1a6   : > { %v1346_v9 = vpop.eup %1345  ;;  %v574_v33 = vadd.f32 1e-08, %v558_v31 }
 0x1a7   : > { %v540_v54 = vpop.xlane.xlu1 %539  ;;  %v2112_v55 = vpop.xlane.xlu0 %541  ;;  %v800_v40 = vmul.f32 %v1346_v9, %v1990_v51 }
 0x1a8   : > { %980 = vperm.xlu1 %1340, %v794_v3   ;;  %v1348_v13 = vpop.eup %1347  ;;  %v560_v34 = vmul.f32 0.0078125, %v540_v54  ;;  %1353 = vrsqrt.f32 %v574_v33 }
 0x1a9   : > { %v797_v36 = vmul.f32 %v1348_v13, %v1980_v14  ;;  %v1350_v51 = vpop.eup %1349 }
 0x1aa   : > { %v576_v41 = vadd.f32 1e-08, %v560_v34  ;;  %v799_v44 = vmul.f32 %v1350_v51, %v1985_v0 }
 0x1ab   : > { %v544_v56 = vpop.xlane.xlu1 %543  ;;  %v2114_v60 = vpop.xlane.xlu0 %545 }
 0x1ac   : > { %v562_v42 = vmul.f32 0.0078125, %v544_v56  ;;  %v1352_v48 = vpop.eup %1351  ;;  %1355 = vrsqrt.f32 %v576_v41 }
 0x1ad   : > { %v801_v3 = vmul.f32 %v1352_v48, %v1993_v2  ;;  %v559_v48 = vmul.f32 0.0078125, %v2110_v52 }
 0x1ae   : > { %v578_v14 = vadd.f32 1e-08, %v562_v42 }
 0x1af   : > { %v820_v61 = vpop.permute.xlu1 %819 }
 0x1b0   : > { %v893_v16 = vmul.f32 %v820_v61, %v797_v36  ;;  %1357 = vrsqrt.f32 %v578_v14 }
 0x1b2   : > { %v1354_v56 = vpop.eup %1353 }
 0x1b3   : > { %v825_v19 = vpop.permute.xlu1 %824  ;;  %v815_v20 = vpop.permute.xlu0 %814  ;;  %v805_v58 = vmul.f32 %v1354_v56, %v2013_v6  ;;  %v556_v6 = vmul.f32 0.0078125, %v2105_v45  ;;  %v555_v45 = vmul.f32 0.0078125, %v2102_v38  ;;  %v575_v38 = vadd.f32 1e-08, %v559_v48 }
 0x1b4   : > { %v2118_v21 = vmul.f32 %v825_v19, %v798_v62  ;;  %v2120_v37 = vmul.f32 %v815_v20, %v796_v7 }
 0x1b5   : > { %v571_v42 = vadd.f32 1e-08, %v555_v45 }
 0x1b6   : > { %v1356_v59 = vpop.eup %1355 }
 0x1b7   : > { %v830_v25 = vpop.permute.xlu1 %829  ;;  %v860_v26 = vpop.permute.xlu0 %859  ;;  %v807_v7 = vmul.f32 %v1356_v59, %v2023_v8 }
 0x1b8   : > { %v895_v49 = vmul.f32 %v830_v25, %v799_v44  ;;  %v901_v61 = vmul.f32 %v860_v26, %v805_v58  ;;  %v572_v26 = vadd.f32 1e-08, %v556_v6 }
 0x1ba   : > { %v1358_v15 = vpop.eup %1357  ;;  %1359 = vrsqrt.f32 %v572_v26 }
 0x1bb   : > { %v835_v27 = vpop.permute.xlu1 %834  ;;  %v870_v11 = vpop.permute.xlu0 %869  ;;  %v809_v20 = vmul.f32 %v1358_v15, %v2033_v10 }
 0x1bc   : > { %v2123_v29 = vmul.f32 %v835_v27, %v800_v40  ;;  %v903_v18 = vmul.f32 %v870_v11, %v807_v7 }
 0x1bf   : > { %v880_v32 = vpop.permute.xlu0 %879  ;;  %v840_v50 = vpop.permute.xlu1 %839 }
 0x1c0   : > { %v897_v54 = vmul.f32 %v840_v50, %v801_v3  ;;  %v905_v23 = vmul.f32 %v880_v32, %v809_v20  ;;  %v563_v50 = vmul.f32 0.0078125, %v2114_v60 }
 0x1c2   : > { %v579_v52 = vadd.f32 1e-08, %v563_v50 }
 0x1c3   : > { %v2126_v35 = vpop.permute.xlu0 %889 }
 0x1c4   : > { %v1360_v27 = vpop.eup %1359 }
 0x1c5   : > { %v803_v31 = vmul.f32 %v1360_v27, %v2003_v4 }
 0x1c7   : > { %v916_v43 = vpop.permute.xlu0 %915 }
 0x1c8   : > { %v989_v1 = vadd.f32 %v916_v43, %v893_v16  ;;  %v557_v43 = vmul.f32 0.0078125, %v2107_v46 }
 0x1ca   : > { %1005 = vst [vmem:[%s2132_s24 + $0x8] sm:$0xff] %v989_v1  ;;  %v573_v1 = vadd.f32 1e-08, %v557_v43 }
 0x1cb   : > { %v926_v30 = vpop.permute.xlu0 %925 }
 0x1cc   : > { %v991_v53 = vadd.f32 %v926_v30, %v895_v49 }
 0x1ce   : > { %1007 = vst [vmem:[%s2132_s24 + $0x18] sm:$0xff] %v991_v53 }
 0x1cf   : > { %v936_v0 = vpop.permute.xlu0 %935 }
 0x1d0   : > { %v993_v17 = vadd.f32 %v936_v0, %v897_v54 }
 0x1d2   : > { %1009 = vst [vmem:[%s2132_s24 + $0x28] sm:$0xff] %v993_v17 }
 0x1d3   : > { %v946_v5 = vpop.permute.xlu0 %945 }
 0x1d7   : > { %v956_v62 = vpop.permute.xlu0 %955 }
 0x1d8   : > { %v997_v2 = vadd.f32 %v956_v62, %v901_v61 }
 0x1da   : > { %1013 = vst [vmem:[%s2132_s24 + $0x48] sm:$0xff] %v997_v2 }
 0x1db   : > { %v966_v19 = vpop.permute.xlu0 %965 }
 0x1dc   : > { %v999_v9 = vadd.f32 %v966_v19, %v903_v18 }
 0x1de   : > { %1015 = vst [vmem:[%s2132_s24 + $0x58] sm:$0xff] %v999_v9 }
 0x1df   : > { %v976_v24 = vpop.permute.xlu0 %975 }
 0x1e0   : > { %v1001_v25 = vadd.f32 %v976_v24, %v905_v23 }
 0x1e2   : > { %1017 = vst [vmem:[%s2132_s24 + $0x68] sm:$0xff] %v1001_v25 }
 0x1e3   : > { %v986_v41 = vpop.permute.xlu0 %985 }
 0x1f0   : > { %v548_v40 = vpop.xlane.xlu1 %547 }
 0x1f1   : > { %v564_v8 = vmul.f32 0.0078125, %v548_v40 }
 0x1f3   : > { %v580_v39 = vadd.f32 1e-08, %v564_v8 }
 0x1f4   : > { %v845_v11 = vpop.permute.xlu1 %844 }
 0x1f5   : > { %1361 = vrsqrt.f32 %v580_v39 }
 0x1f6   : > { %1363 = vrsqrt.f32 %v571_v42 }
 0x1f7   : > { %1365 = vrsqrt.f32 %v573_v1 }
 0x1f8   : > { %v850_v10 = vpop.permute.xlu1 %849  ;;  %1367 = vrsqrt.f32 %v575_v38 }
 0x1f9   : > { %v899_v32 = vmul.f32 %v850_v10, %v803_v31 }
 0x1fb   : > { %v995_v13 = vadd.f32 %v946_v5, %v899_v32 }
 0x1fc   : > { %v855_v33 = vpop.permute.xlu1 %854 }
 0x1fd   : > { %1011 = vst [vmem:[%s2132_s24 + $0x38] sm:$0xff] %v995_v13 }
 0x1ff   : > { %v1362_v34 = vpop.eup %1361 }
 0x200   : > { %v811_v36 = vmul.f32 %v1362_v34, %v2084_v47  ;;  %v865_v51 = vpop.permute.xlu1 %864  ;;  %v561_v47 = vmul.f32 0.0078125, %v2112_v55  ;;  %v1364_v53 = vpop.eup %1363 }
 0x201   : > { %v802_v55 = vmul.f32 %v1364_v53, %v2000_v57  ;;  %v1366_v0 = vpop.eup %1365 }
 0x202   : > { %v907_v16 = vmul.f32 %v2126_v35, %v811_v36  ;;  %v577_v46 = vadd.f32 1e-08, %v561_v47  ;;  %v1368_v5 = vpop.eup %1367 }
 0x203   : > { %v898_v17 = vmul.f32 %v845_v11, %v802_v55  ;;  %v806_v57 = vmul.f32 %v1368_v5, %v2020_v22 }
 0x204   : > { %v1003_v4 = vadd.f32 %v986_v41, %v907_v16  ;;  %v875_v44 = vpop.permute.xlu1 %874  ;;  %1369 = vrsqrt.f32 %v577_v46 }
 0x205   : > { %1371 = vrsqrt.f32 %v579_v52  ;;  %v902_v62 = vmul.f32 %v865_v51, %v806_v57 }
 0x206   : > { %1019 = vst [vmem:[%s2132_s24 + $0x78] sm:$0xff] %v1003_v4 }
 0x208   : > { %v885_v49 = vpop.permute.xlu1 %884 }
 0x20c   : > { %v911_v14 = vpop.permute.xlu1 %910 }
 0x20d   : > { %v988_v35 = vadd.f32 %v911_v14, %v2120_v37 }
 0x20f   : > { %1004 = vst [vmem:[%s2132_s24] sm:$0xff] %v988_v35 }
 0x210   : > { %v921_v30 = vpop.permute.xlu1 %920 }
 0x211   : > { %v990_v3 = vadd.f32 %v921_v30, %v2118_v21  ;;  %v804_v21 = vmul.f32 %v1366_v0, %v2010_v63 }
 0x213   : > { %1006 = vst [vmem:[%s2132_s24 + $0x10] sm:$0xff] %v990_v3  ;;  %v900_v58 = vmul.f32 %v855_v33, %v804_v21 }
 0x214   : > { %v931_v54 = vpop.permute.xlu1 %930 }
 0x215   : > { %v992_v37 = vadd.f32 %v931_v54, %v2123_v29  ;;  %v1370_v29 = vpop.eup %1369 }
 0x216   : > { %v808_v2 = vmul.f32 %v1370_v29, %v2030_v28  ;;  %v1372_v15 = vpop.eup %1371 }
 0x217   : > { %1008 = vst [vmem:[%s2132_s24 + $0x20] sm:$0xff] %v992_v37  ;;  %v810_v19 = vmul.f32 %v1372_v15, %v2042_v12 }
 0x218   : > { %v941_v60 = vpop.permute.xlu1 %940  ;;  %v904_v18 = vmul.f32 %v875_v44, %v808_v2 }
 0x219   : > { %v994_v56 = vadd.f32 %v941_v60, %v898_v17  ;;  %v906_v9 = vmul.f32 %v885_v49, %v810_v19 }
 0x21b   : > { %1010 = vst [vmem:[%s2132_s24 + $0x30] sm:$0xff] %v994_v56 }
 0x21c   : > { %v951_v59 = vpop.permute.xlu1 %950 }
 0x21d   : > { %v996_v61 = vadd.f32 %v951_v59, %v900_v58 }
 0x21f   : > { %1012 = vst [vmem:[%s2132_s24 + $0x40] sm:$0xff] %v996_v61 }
 0x220   : > { %v961_v7 = vpop.permute.xlu1 %960 }
 0x221   : > { %v998_v63 = vadd.f32 %v961_v7, %v902_v62 }
 0x223   : > { %1014 = vst [vmem:[%s2132_s24 + $0x50] sm:$0xff] %v998_v63 }
 0x224   : > { %v971_v22 = vpop.permute.xlu1 %970 }
 0x225   : > { %v1000_v20 = vadd.f32 %v971_v22, %v904_v18 }
 0x227   : > { %1016 = vst [vmem:[%s2132_s24 + $0x60] sm:$0xff] %v1000_v20 }
 0x228   : > { %v981_v28 = vpop.permute.xlu1 %980 }
 0x229   : > { %v1002_v23 = vadd.f32 %v981_v28, %v906_v9 }
 0x22b   : > { %1018 = vst [vmem:[%s2132_s24 + $0x70] sm:$0xff] %v1002_v23 }
 0x22c   : > { %1446 = shalt.err (!%p1443_p0)
}
 0x22d   : > { %s1447_s8 = scalar_lea.hbm %s2175_s13, 2048  ;;  %s1451_s12 = scalar_lea.hbm %s2250_s6, 8192 }
 0x22e   : > { %p1448_p6 = scmp.ne.s32.totalorder %s2175_s13, %s1447_s8  ;;  %p1452_p7 = scmp.lt.u32.totalorder %s2175_s13, %s2250_s6 }
 0x22f   : > { %p1453_p4 = scmp.lt.u32.totalorder %s1451_s12, %s1447_s8  ;;  %p1455_p5 = scmp.lt.u32.totalorder %s1447_s8, %s2175_s13 }
 0x230   : > { %p1449_p9 = pnand %p1448_p6, %p2282_p1 }
 0x231   : > { %p1454_p8 = por %p1453_p4, %p1452_p7 }
 0x232   : > { %p1450_p3 = pneg %p1449_p9 }
 0x233   : > { %p1456_p11 = por %p1455_p5, %p1454_p8 }
 0x235   : > { %p1457_p13 = pnand %p1456_p11, %p1450_p3 }
 0x237   : > { %1460 = shalt.err (!%p1457_p13)
}
 0x238   : > { %s1567_s16 = smov 128   ;;  %s1568_s18 = smov 8  }
 0x239   : > { %1231 = dma.vmem_to_hbm [thread:$0]  (%p2282_p1), %s2178_s27, 2048, %s2175_s13, %s2183_s1, %s1567_s16, %s1567_s16, %s1568_s18  }
 0x23a PF: > { %p1245_p12 = scmp.ge.s32.totalorder %s1559_s7, 2  ;;  %s1051_s17 = sand.u32 1, %s1519_s21  }
 0x23b   : > { %p2283_p2 = scmp.ne.s32.totalorder %s2272_s10, 0  ;;  %s1052_s28 = scalar_lea.sflag [#allocation4], %s1051_s17 }
 0x23d   : > { %p1241_p10 = pnand %p1245_p12, %p2283_p2 }
 0x23f   : > { %1514 = dma.done.wait (!%p1241_p10), %s1052_s28, 2048  }
 0x240   : > { %1516 = vsyncadd (!%p1241_p10), %s1052_s28, 4294965248  ;;  %s25_s7 = sadd.s32 1, %s1559_s7   ;;  %s2284_s15 = sld [smem:[#allocation11_spill]] }
 0x241   : > { %p22_p0 = scmp.ge.s32.totalorder %s25_s7, 6   ;;  %s2285_s23 = sld [smem:[#allocation17_spill]] }
 0x242   : > { %s2286_s19 = sld [smem:[#allocation12_spill]]  ;;  %s2287_s26 = sld [smem:[#allocation16_spill]] }
 0x243   : > { %s2288_s27 = sld [smem:[#allocation13_spill]]  ;;  %s2289_s29 = sld [smem:[#allocation14_spill]] }
 0x244   : > { %s2290_s13 = sld [smem:[#allocation15_spill]]  ;;  %s2291_s21 = smov %s1523_s22 }
 0x245   : > { %s2293_s24 = smov %s1535_s25  ;;  %s2295_s28 = smov %s1555_s30 }
 0x246   : > { %s2292_s22 = smov %s2284_s15  ;;  %24 = sbr.rel (!%p22_p0) target bundleno = 13 (0xd), region = 114 }
 0x248   : > { %s2294_s25 = smov %s2286_s19 }
 0x24a   : > { %s2296_s30 = smov %s2290_s13 }
 0x24d   :  { %1057 = vsyncpa [#allocation3], 1 }
 0x24e   :  { %1059 = vsyncpa [#allocation3 + $0x1], 1 }
 0x24f   :  { %1060 = vsyncpa [#allocation6], 1 }
 0x250   :  { %1062 = vsyncpa [#allocation6 + $0x1], 1 }
 0x251   :  { %1063 = vsyncpa [#allocation4], 1 }
 0x252   :  { %1065 = vsyncpa [#allocation4 + $0x1], 1 }

</bundles_post_ra>
